<compile_context>
chip_gen: v5e
topology: v5e:2x2
jax: 0.10.0
libtpu: 0.0.40
codegen_flags: <defaults>
</compile_context>

<pallas_src>
import jax
import jax.numpy as jnp
from jax.experimental import pallas as pl
from jax.experimental.pallas import tpu as pltpu

LANE = 128   # lane (last-dim) tile
SUBLANE = 8  # f32 sublane tile


def _round_up(n, m):
    return (n + m - 1) // m * m


# ----------------------------------------------------------------------------
# Kernel: whole MLP on one batch tile.  Weights/biases are VMEM-resident
# (constant index_map), x/out are streamed per grid step.
# ----------------------------------------------------------------------------
def mlp_kernel(x_ref, w1_ref, b1_ref, w2_ref, b2_ref, w3_ref, b3_ref, o_ref):
    # x arrives as f32; cast to bf16 right before the MXU (free under DMA/MXU).
    x = x_ref[...].astype(jnp.bfloat16)
    h1 = jnp.dot(x, w1_ref[...], preferred_element_type=jnp.float32)
    h1 = jnp.maximum(h1 + b1_ref[...], 0.0)                       # f32 bias+ReLU
    h2 = jnp.dot(h1.astype(jnp.bfloat16), w2_ref[...],
                 preferred_element_type=jnp.float32)
    h2 = jnp.maximum(h2 + b2_ref[...], 0.0)
    out = jnp.dot(h2.astype(jnp.bfloat16), w3_ref[...],
                  preferred_element_type=jnp.float32)
    o_ref[...] = (out + b3_ref[...]).astype(o_ref.dtype)


# ----------------------------------------------------------------------------
# One-time parameter packing: lane-pad hidden/class dims to 128 and cast the
# weights to bf16.  Do this ONCE, outside the per-step forward.
# ----------------------------------------------------------------------------
def prepare_params(params):
    w1, b1 = params["w1"], params["b1"]
    w2, b2 = params["w2"], params["b2"]
    w3, b3 = params["w3"], params["b3"]
    in_size, hidden = w1.shape
    num_classes = w3.shape[1]
    Hp = _round_up(hidden, LANE)
    Cp = _round_up(num_classes, LANE)

    def pad2(a, r, c):
        return jnp.pad(a, ((0, r - a.shape[0]), (0, c - a.shape[1])))

    # Zero padding keeps semantics: padded weight columns / biases are 0,
    # ReLU(0)=0, and padded K rows of the next layer multiply zero activations.
    # x's K dim (in_size) is kept unpadded (full-extent lane block) to avoid a
    # per-call padded copy of x.
    return {
        "w1": pad2(w1, in_size, Hp).astype(jnp.bfloat16),
        "w2": pad2(w2, Hp, Hp).astype(jnp.bfloat16),
        "w3": pad2(w3, Hp, Cp).astype(jnp.bfloat16),
        "b1": pad2(b1, 1, Hp).astype(jnp.float32),   # biases stay f32
        "b2": pad2(b2, 1, Hp).astype(jnp.float32),
        "b3": pad2(b3, 1, Cp).astype(jnp.float32),
    }


# ----------------------------------------------------------------------------
# Forward pass.
# ----------------------------------------------------------------------------
def neural_net_forward(x, packed, num_classes, *, block_b=512,
                       out_dtype=jnp.float32):
    """x: [B, input_size] f32; packed: output of prepare_params().
    Returns [B, num_classes] in out_dtype."""
    w1, b1 = packed["w1"], packed["b1"]
    w2, b2 = packed["w2"], packed["b2"]
    w3, b3 = packed["w3"], packed["b3"]

    B, in_size = x.shape
    K, Hp = w1.shape
    Cp = w3.shape[1]
    assert K == in_size, "packed w1 does not match x's feature dim"

    # --- batch tile: multiple of 8 sublanes, sized from a VMEM budget -------
    resident_bytes = (2 * (w1.size + w2.size + w3.size)        # bf16 weights
                      + 4 * (b1.size + b2.size + b3.size))     # f32 biases
    per_row_bytes = (2 * 4 * in_size     # x tile (f32, double-buffered)
                     + 2 * 4 * Cp        # out tile (f32, double-buffered)
                     + 3 * 4 * Hp)       # f32 intermediates h1/h2 (+slack)
    budget = 40 * 1024 * 1024            # conservative: fits v7x's 64 MiB VMEM
    avail = max(budget - resident_bytes, per_row_bytes * SUBLANE)
    tb_cap = max(SUBLANE, (avail // per_row_bytes) // SUBLANE * SUBLANE)

    TB = _round_up(max(min(block_b, tb_cap), SUBLANE), SUBLANE)
    B_r = _round_up(B, SUBLANE)
    TB = min(TB, B_r)
    # v7x has 2 TensorCores: keep >= 2 grid steps on the "parallel" batch axis
    # whenever the batch is large enough to split (cheap on v5e/v6e too).
    if B_r >= 2 * SUBLANE:
        TB = min(TB, _round_up(pl.cdiv(B_r, 2), SUBLANE))

    grid = (pl.cdiv(B, TB),)

    # --- VMEM limit sized from the real footprint (+50% headroom) -----------
    footprint = (resident_bytes
                 + 2 * TB * in_size * 4
                 + 2 * TB * Cp * 4
                 + 3 * TB * Hp * 4)
    vmem_limit = int(min(max(footprint * 3 // 2, 32 * 1024 * 1024),
                         60 * 1024 * 1024))
    # TODO(synk): for Hp >= ~4K the resident w2 no longer fits v7x's 64 MiB;
    # tile layers 2/3 over K with pltpu.emit_pipeline in that regime.

    flops = 2 * B * (in_size * Hp + Hp * Hp + Hp * Cp)
    bytes_accessed = (x.size * 4
                      + (w1.size + w2.size + w3.size) * 2
                      + (b1.size + b2.size + b3.size) * 4
                      + B * Cp * jnp.dtype(out_dtype).itemsize)

    def run(weight_pipeline_mode):
        wkw = ({} if weight_pipeline_mode is None
               else {"pipeline_mode": weight_pipeline_mode})
        return pl.pallas_call(
            mlp_kernel,
            out_shape=jax.ShapeDtypeStruct((B, Cp), out_dtype),
            grid=grid,
            in_specs=[
                # x: streamed f32 per batch tile (cast to bf16 in-kernel).
                pl.BlockSpec((TB, in_size), lambda i: (i, 0)),
                # weights / biases: constant index_map -> VMEM-resident.
                pl.BlockSpec((K, Hp), lambda i: (0, 0), **wkw),
                pl.BlockSpec((1, Hp), lambda i: (0, 0), **wkw),
                pl.BlockSpec((Hp, Hp), lambda i: (0, 0), **wkw),
                pl.BlockSpec((1, Hp), lambda i: (0, 0), **wkw),
                pl.BlockSpec((Hp, Cp), lambda i: (0, 0), **wkw),
                pl.BlockSpec((1, Cp), lambda i: (0, 0), **wkw),
            ],
            out_specs=pl.BlockSpec((TB, Cp), lambda i: (i, 0)),
            compiler_params=pltpu.CompilerParams(
                dimension_semantics=("parallel",),
                vmem_limit_bytes=vmem_limit),
            cost_estimate=pl.CostEstimate(
                flops=flops, transcendentals=0,
                bytes_accessed=bytes_accessed),
        )(x, w1, b1, w2, b2, w3, b3)

    try:
        # Single-buffer the resident weights (they are DMA'd only once); the
        # default second buffer is pure VMEM waste.
        out_padded = run(pl.Buffered(1))
    except Exception:
        # Fallback: default double-buffering if this build rejects Buffered(1).
        out_padded = run(None)

    return out_padded[:, :num_classes]


# ----------------------------------------------------------------------------
# Reference / init helpers.
# ----------------------------------------------------------------------------
def init_params(key, input_size, hidden_size, num_classes):
    """Deterministic init mimicking PyTorch nn.Linear (uniform +/- 1/sqrt(fan_in))."""
    ks = jax.random.split(key, 6)

    def linear(kw, kb, fan_in, fan_out):
        bound = 1.0 / jnp.sqrt(fan_in)
        w = jax.random.uniform(kw, (fan_in, fan_out), jnp.float32, -bound, bound)
        b = jax.random.uniform(kb, (1, fan_out), jnp.float32, -bound, bound)
        return w, b

    w1, b1 = linear(ks[0], ks[1], input_size, hidden_size)
    w2, b2 = linear(ks[2], ks[3], hidden_size, hidden_size)
    w3, b3 = linear(ks[4], ks[5], hidden_size, num_classes)
    return {"w1": w1, "b1": b1, "w2": w2, "b2": b2, "w3": w3, "b3": b3}


def reference_forward(x, p):
    h = jnp.maximum(x @ p["w1"] + p["b1"], 0.0)
    h = jnp.maximum(h @ p["w2"] + p["b2"], 0.0)
    return h @ p["w3"] + p["b3"]


if __name__ == "__main__":
    batch, input_size, hidden_size, num_classes = 8, 32, 64, 16

    key = jax.random.PRNGKey(0)
    kx, kp = jax.random.split(key)
    x = jax.random.normal(kx, (batch, input_size), jnp.float32)
    params = init_params(kp, input_size, hidden_size, num_classes)

    packed = prepare_params(params)          # one-time pad + bf16 cast
    out = neural_net_forward(x, packed, num_classes)
    out = jax.block_until_ready(out)

    ref = reference_forward(x, params)
    assert out.shape == (batch, num_classes)
    # bf16 MXU operands with f32 accumulation -> ~1% relative error vs f32 ref.
    assert jnp.allclose(out, ref, atol=3e-2, rtol=3e-2), "mismatch vs reference"

    print("KERNEL_OK")
</pallas_src>

<mosaic_0001>
module attributes {stable_mosaic.version = 11 : i64} {
  func.func @mlp_kernel(%arg0: i32, %arg1: memref<8x32xf32, #tpu.memory_space<vmem>>, %arg2: memref<32x128xbf16, #tpu.memory_space<vmem>>, %arg3: memref<1x128xf32, #tpu.memory_space<vmem>>, %arg4: memref<128x128xbf16, #tpu.memory_space<vmem>>, %arg5: memref<1x128xf32, #tpu.memory_space<vmem>>, %arg6: memref<128x128xbf16, #tpu.memory_space<vmem>>, %arg7: memref<1x128xf32, #tpu.memory_space<vmem>>, %arg8: memref<8x128xf32, #tpu.memory_space<vmem>>) attributes {dimension_semantics = [#tpu.dimension_semantics<parallel>], iteration_bounds = array<i64: 1>, scalar_prefetch = 0 : i64, scratch_operands = 0 : i64, tpu.core_type = #tpu.core_type<tc>, window_params = [{transform_indices = @transform_0, window_bounds = array<i64: 8, 32>}, {pipeline_mode = #tpu.pipeline_mode<synchronous>, transform_indices = @transform_1, window_bounds = array<i64: 32, 128>}, {pipeline_mode = #tpu.pipeline_mode<synchronous>, transform_indices = @transform_2, window_bounds = array<i64: 1, 128>}, {pipeline_mode = #tpu.pipeline_mode<synchronous>, transform_indices = @transform_3, window_bounds = array<i64: 128, 128>}, {pipeline_mode = #tpu.pipeline_mode<synchronous>, transform_indices = @transform_4, window_bounds = array<i64: 1, 128>}, {pipeline_mode = #tpu.pipeline_mode<synchronous>, transform_indices = @transform_5, window_bounds = array<i64: 128, 128>}, {pipeline_mode = #tpu.pipeline_mode<synchronous>, transform_indices = @transform_6, window_bounds = array<i64: 1, 128>}, {transform_indices = @transform_7, window_bounds = array<i64: 8, 128>}]} {
    %c0 = arith.constant 0 : index
    %c0_0 = arith.constant 0 : index
    %0 = vector.load %arg1[%c0, %c0_0] : memref<8x32xf32, #tpu.memory_space<vmem>>, vector<8x32xf32>
    %1 = arith.truncf %0 : vector<8x32xf32> to vector<8x32xbf16>
    %c0_1 = arith.constant 0 : index
    %c0_2 = arith.constant 0 : index
    %2 = vector.load %arg2[%c0_1, %c0_2] : memref<32x128xbf16, #tpu.memory_space<vmem>>, vector<32x128xbf16>
    %cst = arith.constant dense<0.000000e+00> : vector<8x128xf32>
    %3 = tpu.matmul %1, %2, %cst {dimension_numbers = #tpu.dot_dimension_numbers<[1], [0], [0], [1], [0, 0, 1, 1], [], []>} : vector<8x32xbf16>, vector<32x128xbf16>, vector<8x128xf32> -> vector<8x128xf32>
    %c0_3 = arith.constant 0 : index
    %c0_4 = arith.constant 0 : index
    %4 = vector.load %arg3[%c0_3, %c0_4] : memref<1x128xf32, #tpu.memory_space<vmem>>, vector<1x128xf32>
    %5 = vector.broadcast %4 : vector<1x128xf32> to vector<8x128xf32>
    %6 = arith.addf %3, %5 : vector<8x128xf32>
    %cst_5 = arith.constant 0.000000e+00 : f32
    %7 = vector.broadcast %cst_5 : f32 to vector<8x128xf32>
    %8 = arith.maximumf %6, %7 : vector<8x128xf32>
    %9 = arith.truncf %8 : vector<8x128xf32> to vector<8x128xbf16>
    %c0_6 = arith.constant 0 : index
    %c0_7 = arith.constant 0 : index
    %10 = vector.load %arg4[%c0_6, %c0_7] : memref<128x128xbf16, #tpu.memory_space<vmem>>, vector<128x128xbf16>
    %cst_8 = arith.constant dense<0.000000e+00> : vector<8x128xf32>
    %11 = tpu.matmul %9, %10, %cst_8 {dimension_numbers = #tpu.dot_dimension_numbers<[1], [0], [0], [1], [0, 0, 1, 1], [], []>} : vector<8x128xbf16>, vector<128x128xbf16>, vector<8x128xf32> -> vector<8x128xf32>
    %c0_9 = arith.constant 0 : index
    %c0_10 = arith.constant 0 : index
    %12 = vector.load %arg5[%c0_9, %c0_10] : memref<1x128xf32, #tpu.memory_space<vmem>>, vector<1x128xf32>
    %13 = vector.broadcast %12 : vector<1x128xf32> to vector<8x128xf32>
    %14 = arith.addf %11, %13 : vector<8x128xf32>
    %cst_11 = arith.constant 0.000000e+00 : f32
    %15 = vector.broadcast %cst_11 : f32 to vector<8x128xf32>
    %16 = arith.maximumf %14, %15 : vector<8x128xf32>
    %17 = arith.truncf %16 : vector<8x128xf32> to vector<8x128xbf16>
    %c0_12 = arith.constant 0 : index
    %c0_13 = arith.constant 0 : index
    %18 = vector.load %arg6[%c0_12, %c0_13] : memref<128x128xbf16, #tpu.memory_space<vmem>>, vector<128x128xbf16>
    %cst_14 = arith.constant dense<0.000000e+00> : vector<8x128xf32>
    %19 = tpu.matmul %17, %18, %cst_14 {dimension_numbers = #tpu.dot_dimension_numbers<[1], [0], [0], [1], [0, 0, 1, 1], [], []>} : vector<8x128xbf16>, vector<128x128xbf16>, vector<8x128xf32> -> vector<8x128xf32>
    %c0_15 = arith.constant 0 : index
    %c0_16 = arith.constant 0 : index
    %20 = vector.load %arg7[%c0_15, %c0_16] : memref<1x128xf32, #tpu.memory_space<vmem>>, vector<1x128xf32>
    %21 = vector.broadcast %20 : vector<1x128xf32> to vector<8x128xf32>
    %22 = arith.addf %19, %21 : vector<8x128xf32>
    %c0_17 = arith.constant 0 : index
    %c0_18 = arith.constant 0 : index
    %23 = vector.load %arg8[%c0_17, %c0_18] : memref<8x128xf32, #tpu.memory_space<vmem>>, vector<8x128xf32>
    tpu.vector_store %arg8[%c0_17, %c0_18], %22 {strides = array<i32>} : memref<8x128xf32, #tpu.memory_space<vmem>>, vector<8x128xf32>,
    return
  }
  func.func @transform_0(%arg0: i32) -> (i32, i32) {
    %c0_i32 = arith.constant 0 : i32
    %c0_i32_0 = arith.constant 0 : i32
    return %arg0, %c0_i32 : i32, i32
  }
  func.func @transform_1(%arg0: i32) -> (i32, i32) {
    %c0_i32 = arith.constant 0 : i32
    %c0_i32_0 = arith.constant 0 : i32
    %c0_i32_1 = arith.constant 0 : i32
    return %c0_i32, %c0_i32_0 : i32, i32
  }
  func.func @transform_2(%arg0: i32) -> (i32, i32) {
    %c0_i32 = arith.constant 0 : i32
    %c0_i32_0 = arith.constant 0 : i32
    %c0_i32_1 = arith.constant 0 : i32
    return %c0_i32, %c0_i32_0 : i32, i32
  }
  func.func @transform_3(%arg0: i32) -> (i32, i32) {
    %c0_i32 = arith.constant 0 : i32
    %c0_i32_0 = arith.constant 0 : i32
    %c0_i32_1 = arith.constant 0 : i32
    return %c0_i32, %c0_i32_0 : i32, i32
  }
  func.func @transform_4(%arg0: i32) -> (i32, i32) {
    %c0_i32 = arith.constant 0 : i32
    %c0_i32_0 = arith.constant 0 : i32
    %c0_i32_1 = arith.constant 0 : i32
    return %c0_i32, %c0_i32_0 : i32, i32
  }
  func.func @transform_5(%arg0: i32) -> (i32, i32) {
    %c0_i32 = arith.constant 0 : i32
    %c0_i32_0 = arith.constant 0 : i32
    %c0_i32_1 = arith.constant 0 : i32
    return %c0_i32, %c0_i32_0 : i32, i32
  }
  func.func @transform_6(%arg0: i32) -> (i32, i32) {
    %c0_i32 = arith.constant 0 : i32
    %c0_i32_0 = arith.constant 0 : i32
    %c0_i32_1 = arith.constant 0 : i32
    return %c0_i32, %c0_i32_0 : i32, i32
  }
  func.func @transform_7(%arg0: i32) -> (i32, i32) {
    %c0_i32 = arith.constant 0 : i32
    %c0_i32_0 = arith.constant 0 : i32
    return %arg0, %c0_i32 : i32, i32
  }
}

module attributes {stable_mosaic.version = 11 : i64} {
  func.func @mlp_kernel(%arg0: i32, %arg1: memref<8x32xf32, #tpu.memory_space<vmem>>, %arg2: memref<32x128xbf16, #tpu.memory_space<vmem>>, %arg3: memref<1x128xf32, #tpu.memory_space<vmem>>, %arg4: memref<128x128xbf16, #tpu.memory_space<vmem>>, %arg5: memref<1x128xf32, #tpu.memory_space<vmem>>, %arg6: memref<128x128xbf16, #tpu.memory_space<vmem>>, %arg7: memref<1x128xf32, #tpu.memory_space<vmem>>, %arg8: memref<8x128xf32, #tpu.memory_space<vmem>>) attributes {dimension_semantics = [#tpu.dimension_semantics<parallel>], iteration_bounds = array<i64: 1>, scalar_prefetch = 0 : i64, scratch_operands = 0 : i64, tpu.core_type = #tpu.core_type<tc>, window_params = [{transform_indices = @transform_0, window_bounds = array<i64: 8, 32>}, {pipeline_mode = #tpu.pipeline_mode<synchronous>, transform_indices = @transform_1, window_bounds = array<i64: 32, 128>}, {pipeline_mode = #tpu.pipeline_mode<synchronous>, transform_indices = @transform_2, window_bounds = array<i64: 1, 128>}, {pipeline_mode = #tpu.pipeline_mode<synchronous>, transform_indices = @transform_3, window_bounds = array<i64: 128, 128>}, {pipeline_mode = #tpu.pipeline_mode<synchronous>, transform_indices = @transform_4, window_bounds = array<i64: 1, 128>}, {pipeline_mode = #tpu.pipeline_mode<synchronous>, transform_indices = @transform_5, window_bounds = array<i64: 128, 128>}, {pipeline_mode = #tpu.pipeline_mode<synchronous>, transform_indices = @transform_6, window_bounds = array<i64: 1, 128>}, {transform_indices = @transform_7, window_bounds = array<i64: 8, 128>}]} {
    %c0 = arith.constant 0 : index
    %c0_0 = arith.constant 0 : index
    %0 = vector.load %arg1[%c0, %c0_0] : memref<8x32xf32, #tpu.memory_space<vmem>>, vector<8x32xf32>
    %1 = arith.truncf %0 : vector<8x32xf32> to vector<8x32xbf16>
    %c0_1 = arith.constant 0 : index
    %c0_2 = arith.constant 0 : index
    %2 = vector.load %arg2[%c0_1, %c0_2] : memref<32x128xbf16, #tpu.memory_space<vmem>>, vector<32x128xbf16>
    %cst = arith.constant dense<0.000000e+00> : vector<8x128xf32>
    %3 = tpu.matmul %1, %2, %cst {dimension_numbers = #tpu.dot_dimension_numbers<[1], [0], [0], [1], [0, 0, 1, 1], [], []>} : vector<8x32xbf16>, vector<32x128xbf16>, vector<8x128xf32> -> vector<8x128xf32>
    %c0_3 = arith.constant 0 : index
    %c0_4 = arith.constant 0 : index
    %4 = vector.load %arg3[%c0_3, %c0_4] : memref<1x128xf32, #tpu.memory_space<vmem>>, vector<1x128xf32>
    %5 = vector.broadcast %4 : vector<1x128xf32> to vector<8x128xf32>
    %6 = arith.addf %3, %5 : vector<8x128xf32>
    %cst_5 = arith.constant 0.000000e+00 : f32
    %7 = vector.broadcast %cst_5 : f32 to vector<8x128xf32>
    %8 = arith.maximumf %6, %7 : vector<8x128xf32>
    %9 = arith.truncf %8 : vector<8x128xf32> to vector<8x128xbf16>
    %c0_6 = arith.constant 0 : index
    %c0_7 = arith.constant 0 : index
    %10 = vector.load %arg4[%c0_6, %c0_7] : memref<128x128xbf16, #tpu.memory_space<vmem>>, vector<128x128xbf16>
    %cst_8 = arith.constant dense<0.000000e+00> : vector<8x128xf32>
    %11 = tpu.matmul %9, %10, %cst_8 {dimension_numbers = #tpu.dot_dimension_numbers<[1], [0], [0], [1], [0, 0, 1, 1], [], []>} : vector<8x128xbf16>, vector<128x128xbf16>, vector<8x128xf32> -> vector<8x128xf32>
    %c0_9 = arith.constant 0 : index
    %c0_10 = arith.constant 0 : index
    %12 = vector.load %arg5[%c0_9, %c0_10] : memref<1x128xf32, #tpu.memory_space<vmem>>, vector<1x128xf32>
    %13 = vector.broadcast %12 : vector<1x128xf32> to vector<8x128xf32>
    %14 = arith.addf %11, %13 : vector<8x128xf32>
    %cst_11 = arith.constant 0.000000e+00 : f32
    %15 = vector.broadcast %cst_11 : f32 to vector<8x128xf32>
    %16 = arith.maximumf %14, %15 : vector<8x128xf32>
    %17 = arith.truncf %16 : vector<8x128xf32> to vector<8x128xbf16>
    %c0_12 = arith.constant 0 : index
    %c0_13 = arith.constant 0 : index
    %18 = vector.load %arg6[%c0_12, %c0_13] : memref<128x128xbf16, #tpu.memory_space<vmem>>, vector<128x128xbf16>
    %cst_14 = arith.constant dense<0.000000e+00> : vector<8x128xf32>
    %19 = tpu.matmul %17, %18, %cst_14 {dimension_numbers = #tpu.dot_dimension_numbers<[1], [0], [0], [1], [0, 0, 1, 1], [], []>} : vector<8x128xbf16>, vector<128x128xbf16>, vector<8x128xf32> -> vector<8x128xf32>
    %c0_15 = arith.constant 0 : index
    %c0_16 = arith.constant 0 : index
    %20 = vector.load %arg7[%c0_15, %c0_16] : memref<1x128xf32, #tpu.memory_space<vmem>>, vector<1x128xf32>
    %21 = vector.broadcast %20 : vector<1x128xf32> to vector<8x128xf32>
    %22 = arith.addf %19, %21 : vector<8x128xf32>
    %c0_17 = arith.constant 0 : index
    %c0_18 = arith.constant 0 : index
    %23 = vector.load %arg8[%c0_17, %c0_18] : memref<8x128xf32, #tpu.memory_space<vmem>>, vector<8x128xf32>
    tpu.vector_store %arg8[%c0_17, %c0_18], %22 {strides = array<i32>} : memref<8x128xf32, #tpu.memory_space<vmem>>, vector<8x128xf32>,
    return
  }
  func.func @transform_0(%arg0: i32) -> (i32, i32) {
    %c0_i32 = arith.constant 0 : i32
    %c0_i32_0 = arith.constant 0 : i32
    return %arg0, %c0_i32 : i32, i32
  }
  func.func @transform_1(%arg0: i32) -> (i32, i32) {
    %c0_i32 = arith.constant 0 : i32
    %c0_i32_0 = arith.constant 0 : i32
    %c0_i32_1 = arith.constant 0 : i32
    return %c0_i32, %c0_i32_0 : i32, i32
  }
  func.func @transform_2(%arg0: i32) -> (i32, i32) {
    %c0_i32 = arith.constant 0 : i32
    %c0_i32_0 = arith.constant 0 : i32
    %c0_i32_1 = arith.constant 0 : i32
    return %c0_i32, %c0_i32_0 : i32, i32
  }
  func.func @transform_3(%arg0: i32) -> (i32, i32) {
    %c0_i32 = arith.constant 0 : i32
    %c0_i32_0 = arith.constant 0 : i32
    %c0_i32_1 = arith.constant 0 : i32
    return %c0_i32, %c0_i32_0 : i32, i32
  }
  func.func @transform_4(%arg0: i32) -> (i32, i32) {
    %c0_i32 = arith.constant 0 : i32
    %c0_i32_0 = arith.constant 0 : i32
    %c0_i32_1 = arith.constant 0 : i32
    return %c0_i32, %c0_i32_0 : i32, i32
  }
  func.func @transform_5(%arg0: i32) -> (i32, i32) {
    %c0_i32 = arith.constant 0 : i32
    %c0_i32_0 = arith.constant 0 : i32
    %c0_i32_1 = arith.constant 0 : i32
    return %c0_i32, %c0_i32_0 : i32, i32
  }
  func.func @transform_6(%arg0: i32) -> (i32, i32) {
    %c0_i32 = arith.constant 0 : i32
    %c0_i32_0 = arith.constant 0 : i32
    %c0_i32_1 = arith.constant 0 : i32
    return %c0_i32, %c0_i32_0 : i32, i32
  }
  func.func @transform_7(%arg0: i32) -> (i32, i32) {
    %c0_i32 = arith.constant 0 : i32
    %c0_i32_0 = arith.constant 0 : i32
    return %arg0, %c0_i32 : i32, i32
  }
}

</mosaic_0001>

<bundles_post_ra>
// kernel: tpu_custom_call.1
= control target key start
LH: loop header
LB: loop body
LE: loop exit
PB: predicated region body
PF: predicated region fallthrough
CT: control target
= control target key end

     0   :  { %12 = vsyncpa [#allocation3], 0  ;;  %s614_s0 = inlined_call_operand.hbm [shape: f32[8,32], index: 0, kind: input, shape index: {}]   ;;  %s615_s1 = inlined_call_operand.hbm [shape: bf16[32,128], index: 1, kind: input, shape index: {}]   ;;  %s616_s2 = inlined_call_operand.vmem [shape: f32[1,128], index: 2, kind: input, shape index: {}]   ;;  %s617_s3 = inlined_call_operand.hbm [shape: bf16[128,128], index: 3, kind: input, shape index: {}]   ;;  %s618_s4 = inlined_call_operand.vmem [shape: f32[1,128], index: 4, kind: input, shape index: {}]   ;;  %s619_s5 = inlined_call_operand.hbm [shape: bf16[128,128], index: 5, kind: input, shape index: {}]   ;;  %s620_s6 = inlined_call_operand.vmem [shape: f32[1,128], index: 6, kind: input, shape index: {}]   ;;  %s621_s7 = inlined_call_operand.hbm [shape: f32[8,128], index: 7, kind: output, shape index: {}]  }
   0x1   :  { %13 = vsyncpa [#allocation6], 0 }
   0x2   :  { %14 = vsyncpa [#allocation9], 0  ;;  %s31_s26 = sshll.u32 %s615_s1, 4  ;;  %s32_s26 = int_to_ptr.hbm [resolvable:$true] %s31_s26 }
   0x3   :  { %15 = vsyncpa [#allocation4], 0  ;;  %s543_s27 = smov [#allocation5]   ;;  %s21_s8 = sshll.u32 %s614_s0, 4  ;;  %s22_s8 = int_to_ptr.hbm [resolvable:$true] %s21_s8 }
   0x4   :  { %s33_s28 = sshll.u32 %s543_s27, 4  ;;  %s544_s9 = smov 64   ;;  %s34_s28 = int_to_ptr.vmem [resolvable:$true] %s33_s28 }
   0x5   :  { %s545_s10 = smov 4   ;;  %s546_s11 = smov [#allocation2]  }
   0x6   :  { %39 = dma.hbm_to_vmem [thread:$0]  %s32_s26, 256, %s34_s28, [#allocation6], %s544_s9, %s544_s9, %s545_s10  }
   0x7   :  { %s23_s12 = sshll.u32 %s546_s11, 4  ;;  %s46_s15 = sshll.u32 %s617_s3, 4  ;;  %s24_s12 = int_to_ptr.vmem [resolvable:$true] %s23_s12  ;;  %s47_s15 = int_to_ptr.hbm [resolvable:$true] %s46_s15 }
   0x8   :  { %26 = dma.hbm_to_vmem [thread:$0]  %s22_s8, 128, %s24_s12, [#allocation3]  }
   0x9   :  { %s61_s17 = sshll.u32 %s619_s5, 4  ;;  %s547_s18 = smov [#allocation7]   ;;  %s62_s17 = int_to_ptr.hbm [resolvable:$true] %s61_s17 }
   0xa   :  { %s48_s19 = sshll.u32 %s547_s18, 4  ;;  %s548_s0 = smov [#allocation8]   ;;  %s49_s19 = int_to_ptr.vmem [resolvable:$true] %s48_s19 }
   0xb   :  { %54 = dma.hbm_to_vmem [thread:$0]  %s47_s15, 1024, %s49_s19, [#allocation6], %s544_s9, %s544_s9, %s545_s10  }
   0xc   :  { %s63_s20 = sshll.u32 %s548_s0, 4  ;;  %s64_s20 = int_to_ptr.vmem [resolvable:$true] %s63_s20 }
   0xd   :  { %69 = dma.hbm_to_vmem [thread:$0]  %s62_s17, 1024, %s64_s20, [#allocation9], %s544_s9, %s544_s9, %s545_s10  }
   0xe   :  { %535 = dma.done.wait [#allocation3], 128  }
   0xf   :  { %536 = vsyncadd [#allocation3], 4294967168 }
  0x10   :  { %537 = dma.done.wait [#allocation6], 1280  }
  0x11   :  { %538 = vsyncadd [#allocation6], 4294966016 }
  0x12   :  { %539 = dma.done.wait [#allocation9], 1024  }
  0x13   :  { %540 = vsyncadd [#allocation9], 4294966272  ;;  %v388_v0 = vld [vmem:[#allocation5 + $0x8] sm:$0xff]  ;;  %v387_v2 = vld [vmem:[#allocation5] sm:$0xff]  ;;  %vm111_vm0 = vcmask 261120   ;;  %s549_s24 = smov [#allocation10]  }
  0x14   :  { %v396_v1 = vld [vmem:[#allocation7 + $0x38] sm:$0xff]  ;;  %121 = vmatpush.bf16.msra.mxu0 %v388_v0  ;;  %v89_v3 = vld [vmem:[#allocation2] sm:$0xff]  ;;  %v395_v4 = vld [vmem:[#allocation7 + $0x30] sm:$0xff]  ;;  %s300_s25 = sshll.u32 %s549_s24, 4  ;;  %s302_s28 = sshll.u32 %s621_s7, 4  ;;  %s301_s25 = int_to_ptr.vmem [resolvable:$true] %s300_s25  ;;  %s303_s28 = int_to_ptr.hbm [resolvable:$true] %s302_s28 }
  0x15   :  { %198 = vmatpush.bf16.msra.mxu1 %v396_v1  ;;  %v90_v5 = vpack.c.bf16 %v89_v3, %v89_v3  ;;  %v394_v6 = vld [vmem:[#allocation7 + $0x28] sm:$0xff]  ;;  %v393_v7 = vld [vmem:[#allocation7 + $0x20] sm:$0xff]  ;;  %v392_v8 = vld [vmem:[#allocation7 + $0x18] sm:$0xff] }
  0x16   :  { %v391_v9 = vld [vmem:[#allocation7 + $0x10] sm:$0xff]  ;;  %v390_v10 = vld [vmem:[#allocation7 + $0x8] sm:$0xff]  ;;  %v389_v11 = vld [vmem:[#allocation7] sm:$0xff] }
  0x17   :  { %v404_v12 = vld [vmem:[#allocation8 + $0x38] sm:$0xff]  ;;  %v403_v13 = vld [vmem:[#allocation8 + $0x30] sm:$0xff]  ;;  %v402_v14 = vld [vmem:[#allocation8 + $0x28] sm:$0xff] }
  0x18   :  { %122 = vmatpush.bf16.msra.mxu0 %v387_v2  ;;  %281 = vmatpush.bf16.msra.mxu2 %v404_v12  ;;  %v401_v15 = vld [vmem:[#allocation8 + $0x20] sm:$0xff]  ;;  %v400_v16 = vld [vmem:[#allocation8 + $0x18] sm:$0xff]  ;;  %v399_v17 = vld [vmem:[#allocation8 + $0x10] sm:$0xff] }
  0x19   :  { %199 = vmatpush.bf16.msra.mxu1 %v395_v4  ;;  %v412_v18 = vld [vmem:[%s616_s2] ss:$0 sm:$0xff]  ;;  %v397_v25 = vld [vmem:[#allocation8] sm:$0xff] }
  0x1a   :  { %v398_v24 = vld [vmem:[#allocation8 + $0x8] sm:$0xff] }
  0x1b   :  { %322 = vmatmul.msk.bf16.vlgmr.msra.gmra.mxu0 %vm111_vm0, %v90_v5  ;;  %v413_v26 = vld [vmem:[%s618_s4] ss:$0 sm:$0xff] }
  0x1c   :  { %282 = vmatpush.bf16.msra.mxu2 %v403_v13  ;;  %v414_v32 = vld [vmem:[%s620_s6] ss:$0 sm:$0xff] }
  0x1d   :  { %200 = vmatpush.bf16.msra.mxu1 %v394_v6 }
  0x20   :  { %283 = vmatpush.bf16.msra.mxu2 %v402_v14 }
  0x21   :  { %201 = vmatpush.bf16.msra.mxu1 %v393_v7 }
  0x24   :  { %284 = vmatpush.bf16.msra.mxu2 %v401_v15 }
  0x25   :  { %202 = vmatpush.bf16.msra.mxu1 %v392_v8 }
  0x28   :  { %285 = vmatpush.bf16.msra.mxu2 %v400_v16 }
  0x29   :  { %203 = vmatpush.bf16.msra.mxu1 %v391_v9 }
  0x2c   :  { %286 = vmatpush.bf16.msra.mxu2 %v399_v17 }
  0x2d   :  { %204 = vmatpush.bf16.msra.mxu1 %v390_v10 }
  0x30   :  { %287 = vmatpush.bf16.msra.mxu2 %v398_v24 }
  0x31   :  { %205 = vmatpush.bf16.msra.mxu1 %v389_v11 }
  0x34   :  { %288 = vmatpush.bf16.msra.mxu2 %v397_v25 }
  0x98   :  { %v124_v19 = vpop.f32.mrf.mxu0 }
  0x99   :  { %v125_v20 = vadd.f32 %v412_v18, %v124_v19 }
  0x9b   :  { %v128_v21 = vmax.f32 %v125_v20, 0.0 }
  0x9d   :  { %v129_v22 = vpack.c.bf16 %v128_v21, %v128_v21 }
  0x9f   :  { %206 = vmatmul.bf16.vlgmr.msra.gmra.mxu1 %v129_v22 }
  0xa0   :  { %v126_v23 = vpop.f32.mrf.mxu0 }
 0x11c   :  { %v207_v27 = vpop.f32.mrf.mxu1 }
 0x11d   :  { %v208_v28 = vadd.f32 %v413_v26, %v207_v27 }
 0x11f   :  { %v211_v29 = vmax.f32 %v208_v28, 0.0 }
 0x121   :  { %v212_v30 = vpack.c.bf16 %v211_v29, %v211_v29 }
 0x123   :  { %289 = vmatmul.bf16.vlgmr.msra.gmra.mxu2 %v212_v30 }
 0x124   :  { %v209_v31 = vpop.f32.mrf.mxu1 }
 0x1a6   :  { %v290_v33 = vpop.f32.mrf.mxu2 }
 0x1a7   :  { %v291_v34 = vadd.f32 %v414_v32, %v290_v33 }
 0x1a9   :  { %294 = vst [vmem:[#allocation10] sm:$0xff] %v291_v34 }
 0x1aa   :  { %305 = dma.vmem_to_hbm [thread:$0]  %s301_s25, 128, %s303_s28, [#allocation4]  }
 0x1ae   :  { %v292_v35 = vpop.f32.mrf.mxu2 }
 0x1af   :  { %541 = dma.done.wait [#allocation4], 128  }
 0x1b0   :  { %542 = vsyncadd [#allocation4], 4294967168 }
 0x1b1   :  { %310 = vsyncpa [#allocation3], 1 }
 0x1b2   :  { %311 = vsyncpa [#allocation6], 1 }
 0x1b3   :  { %312 = vsyncpa [#allocation9], 1 }
 0x1b4   :  { %313 = vsyncpa [#allocation4], 1 }

// kernel: tpu_custom_call.1
= control target key start
LH: loop header
LB: loop body
LE: loop exit
PB: predicated region body
PF: predicated region fallthrough
CT: control target
= control target key end

     0   :  { %12 = vsyncpa [#allocation3], 0  ;;  %s614_s0 = inlined_call_operand.hbm [shape: f32[8,32], index: 0, kind: input, shape index: {}]   ;;  %s615_s1 = inlined_call_operand.hbm [shape: bf16[32,128], index: 1, kind: input, shape index: {}]   ;;  %s616_s2 = inlined_call_operand.vmem [shape: f32[1,128], index: 2, kind: input, shape index: {}]   ;;  %s617_s3 = inlined_call_operand.hbm [shape: bf16[128,128], index: 3, kind: input, shape index: {}]   ;;  %s618_s4 = inlined_call_operand.vmem [shape: f32[1,128], index: 4, kind: input, shape index: {}]   ;;  %s619_s5 = inlined_call_operand.hbm [shape: bf16[128,128], index: 5, kind: input, shape index: {}]   ;;  %s620_s6 = inlined_call_operand.vmem [shape: f32[1,128], index: 6, kind: input, shape index: {}]   ;;  %s621_s7 = inlined_call_operand.hbm [shape: f32[8,128], index: 7, kind: output, shape index: {}]  }
   0x1   :  { %13 = vsyncpa [#allocation6], 0 }
   0x2   :  { %14 = vsyncpa [#allocation9], 0  ;;  %s31_s26 = sshll.u32 %s615_s1, 4  ;;  %s32_s26 = int_to_ptr.hbm [resolvable:$true] %s31_s26 }
   0x3   :  { %15 = vsyncpa [#allocation4], 0  ;;  %s543_s27 = smov [#allocation5]   ;;  %s21_s8 = sshll.u32 %s614_s0, 4  ;;  %s22_s8 = int_to_ptr.hbm [resolvable:$true] %s21_s8 }
   0x4   :  { %s33_s28 = sshll.u32 %s543_s27, 4  ;;  %s544_s9 = smov 64   ;;  %s34_s28 = int_to_ptr.vmem [resolvable:$true] %s33_s28 }
   0x5   :  { %s545_s10 = smov 4   ;;  %s546_s11 = smov [#allocation2]  }
   0x6   :  { %39 = dma.hbm_to_vmem [thread:$0]  %s32_s26, 256, %s34_s28, [#allocation6], %s544_s9, %s544_s9, %s545_s10  }
   0x7   :  { %s23_s12 = sshll.u32 %s546_s11, 4  ;;  %s46_s15 = sshll.u32 %s617_s3, 4  ;;  %s24_s12 = int_to_ptr.vmem [resolvable:$true] %s23_s12  ;;  %s47_s15 = int_to_ptr.hbm [resolvable:$true] %s46_s15 }
   0x8   :  { %26 = dma.hbm_to_vmem [thread:$0]  %s22_s8, 128, %s24_s12, [#allocation3]  }
   0x9   :  { %s61_s17 = sshll.u32 %s619_s5, 4  ;;  %s547_s18 = smov [#allocation7]   ;;  %s62_s17 = int_to_ptr.hbm [resolvable:$true] %s61_s17 }
   0xa   :  { %s48_s19 = sshll.u32 %s547_s18, 4  ;;  %s548_s0 = smov [#allocation8]   ;;  %s49_s19 = int_to_ptr.vmem [resolvable:$true] %s48_s19 }
   0xb   :  { %54 = dma.hbm_to_vmem [thread:$0]  %s47_s15, 1024, %s49_s19, [#allocation6], %s544_s9, %s544_s9, %s545_s10  }
   0xc   :  { %s63_s20 = sshll.u32 %s548_s0, 4  ;;  %s64_s20 = int_to_ptr.vmem [resolvable:$true] %s63_s20 }
   0xd   :  { %69 = dma.hbm_to_vmem [thread:$0]  %s62_s17, 1024, %s64_s20, [#allocation9], %s544_s9, %s544_s9, %s545_s10  }
   0xe   :  { %535 = dma.done.wait [#allocation3], 128  }
   0xf   :  { %536 = vsyncadd [#allocation3], 4294967168 }
  0x10   :  { %537 = dma.done.wait [#allocation6], 1280  }
  0x11   :  { %538 = vsyncadd [#allocation6], 4294966016 }
  0x12   :  { %539 = dma.done.wait [#allocation9], 1024  }
  0x13   :  { %540 = vsyncadd [#allocation9], 4294966272  ;;  %v388_v0 = vld [vmem:[#allocation5 + $0x8] sm:$0xff]  ;;  %v387_v2 = vld [vmem:[#allocation5] sm:$0xff]  ;;  %vm111_vm0 = vcmask 261120   ;;  %s549_s24 = smov [#allocation10]  }
  0x14   :  { %v396_v1 = vld [vmem:[#allocation7 + $0x38] sm:$0xff]  ;;  %121 = vmatpush.bf16.msra.mxu0 %v388_v0  ;;  %v89_v3 = vld [vmem:[#allocation2] sm:$0xff]  ;;  %v395_v4 = vld [vmem:[#allocation7 + $0x30] sm:$0xff]  ;;  %s300_s25 = sshll.u32 %s549_s24, 4  ;;  %s302_s28 = sshll.u32 %s621_s7, 4  ;;  %s301_s25 = int_to_ptr.vmem [resolvable:$true] %s300_s25  ;;  %s303_s28 = int_to_ptr.hbm [resolvable:$true] %s302_s28 }
  0x15   :  { %198 = vmatpush.bf16.msra.mxu1 %v396_v1  ;;  %v90_v5 = vpack.c.bf16 %v89_v3, %v89_v3  ;;  %v394_v6 = vld [vmem:[#allocation7 + $0x28] sm:$0xff]  ;;  %v393_v7 = vld [vmem:[#allocation7 + $0x20] sm:$0xff]  ;;  %v392_v8 = vld [vmem:[#allocation7 + $0x18] sm:$0xff] }
  0x16   :  { %v391_v9 = vld [vmem:[#allocation7 + $0x10] sm:$0xff]  ;;  %v390_v10 = vld [vmem:[#allocation7 + $0x8] sm:$0xff]  ;;  %v389_v11 = vld [vmem:[#allocation7] sm:$0xff] }
  0x17   :  { %v404_v12 = vld [vmem:[#allocation8 + $0x38] sm:$0xff]  ;;  %v403_v13 = vld [vmem:[#allocation8 + $0x30] sm:$0xff]  ;;  %v402_v14 = vld [vmem:[#allocation8 + $0x28] sm:$0xff] }
  0x18   :  { %122 = vmatpush.bf16.msra.mxu0 %v387_v2  ;;  %281 = vmatpush.bf16.msra.mxu2 %v404_v12  ;;  %v401_v15 = vld [vmem:[#allocation8 + $0x20] sm:$0xff]  ;;  %v400_v16 = vld [vmem:[#allocation8 + $0x18] sm:$0xff]  ;;  %v399_v17 = vld [vmem:[#allocation8 + $0x10] sm:$0xff] }
  0x19   :  { %199 = vmatpush.bf16.msra.mxu1 %v395_v4  ;;  %v412_v18 = vld [vmem:[%s616_s2] ss:$0 sm:$0xff]  ;;  %v397_v25 = vld [vmem:[#allocation8] sm:$0xff] }
  0x1a   :  { %v398_v24 = vld [vmem:[#allocation8 + $0x8] sm:$0xff] }
  0x1b   :  { %322 = vmatmul.msk.bf16.vlgmr.msra.gmra.mxu0 %vm111_vm0, %v90_v5  ;;  %v413_v26 = vld [vmem:[%s618_s4] ss:$0 sm:$0xff] }
  0x1c   :  { %282 = vmatpush.bf16.msra.mxu2 %v403_v13  ;;  %v414_v32 = vld [vmem:[%s620_s6] ss:$0 sm:$0xff] }
  0x1d   :  { %200 = vmatpush.bf16.msra.mxu1 %v394_v6 }
  0x20   :  { %283 = vmatpush.bf16.msra.mxu2 %v402_v14 }
  0x21   :  { %201 = vmatpush.bf16.msra.mxu1 %v393_v7 }
  0x24   :  { %284 = vmatpush.bf16.msra.mxu2 %v401_v15 }
  0x25   :  { %202 = vmatpush.bf16.msra.mxu1 %v392_v8 }
  0x28   :  { %285 = vmatpush.bf16.msra.mxu2 %v400_v16 }
  0x29   :  { %203 = vmatpush.bf16.msra.mxu1 %v391_v9 }
  0x2c   :  { %286 = vmatpush.bf16.msra.mxu2 %v399_v17 }
  0x2d   :  { %204 = vmatpush.bf16.msra.mxu1 %v390_v10 }
  0x30   :  { %287 = vmatpush.bf16.msra.mxu2 %v398_v24 }
  0x31   :  { %205 = vmatpush.bf16.msra.mxu1 %v389_v11 }
  0x34   :  { %288 = vmatpush.bf16.msra.mxu2 %v397_v25 }
  0x98   :  { %v124_v19 = vpop.f32.mrf.mxu0 }
  0x99   :  { %v125_v20 = vadd.f32 %v412_v18, %v124_v19 }
  0x9b   :  { %v128_v21 = vmax.f32 %v125_v20, 0.0 }
  0x9d   :  { %v129_v22 = vpack.c.bf16 %v128_v21, %v128_v21 }
  0x9f   :  { %206 = vmatmul.bf16.vlgmr.msra.gmra.mxu1 %v129_v22 }
  0xa0   :  { %v126_v23 = vpop.f32.mrf.mxu0 }
 0x11c   :  { %v207_v27 = vpop.f32.mrf.mxu1 }
 0x11d   :  { %v208_v28 = vadd.f32 %v413_v26, %v207_v27 }
 0x11f   :  { %v211_v29 = vmax.f32 %v208_v28, 0.0 }
 0x121   :  { %v212_v30 = vpack.c.bf16 %v211_v29, %v211_v29 }
 0x123   :  { %289 = vmatmul.bf16.vlgmr.msra.gmra.mxu2 %v212_v30 }
 0x124   :  { %v209_v31 = vpop.f32.mrf.mxu1 }
 0x1a6   :  { %v290_v33 = vpop.f32.mrf.mxu2 }
 0x1a7   :  { %v291_v34 = vadd.f32 %v414_v32, %v290_v33 }
 0x1a9   :  { %294 = vst [vmem:[#allocation10] sm:$0xff] %v291_v34 }
 0x1aa   :  { %305 = dma.vmem_to_hbm [thread:$0]  %s301_s25, 128, %s303_s28, [#allocation4]  }
 0x1ae   :  { %v292_v35 = vpop.f32.mrf.mxu2 }
 0x1af   :  { %541 = dma.done.wait [#allocation4], 128  }
 0x1b0   :  { %542 = vsyncadd [#allocation4], 4294967168 }
 0x1b1   :  { %310 = vsyncpa [#allocation3], 1 }
 0x1b2   :  { %311 = vsyncpa [#allocation6], 1 }
 0x1b3   :  { %312 = vsyncpa [#allocation9], 1 }
 0x1b4   :  { %313 = vsyncpa [#allocation4], 1 }

</bundles_post_ra>
